<compile_context>
chip_gen: v5e
topology: v5e:2x2
jax: 0.10.0
libtpu: 0.0.40
codegen_flags: <defaults>
</compile_context>

<pallas_src>
import jax
import jax.numpy as jnp
from jax.experimental import pallas as pl
from jax.experimental.pallas import tpu as pltpu

HIDDEN = 768       # DistilBERT hidden size (hard-coded by the module: Linear(768, 20))
MID = 20           # another_linear / another_linear_v2 width
NUM_LABELS = 2     # classifier output
LN_EPS = 1e-12     # DistilBERT LayerNorm eps
MAX_TILE_B = 1024  # rows per grid step (bf16 tile = 1.5 MiB -> fits v5e/v6e/v7x VMEM easily)


def _round_up(x, m):
    return (x + m - 1) // m * m


def _truncater_cls_kernel(emb_ref, w1_ref, b1_ref, w2_ref, b2_ref, wc_ref, bc_ref,
                          logits_ref):
    # emb_ref: bf16 [TILE_B, 768] = (word + position-0) embedding of the CLS token.
    x = emb_ref[...].astype(jnp.float32)

    # --- LayerNorm(768, eps=1e-12): two-pass (centered) variance, f32 math.
    #     The affine (gamma, beta) is folded into W1'/b1' in the wrapper, so the kernel
    #     only normalizes. ---
    inv_n = jnp.float32(1.0 / HIDDEN)
    mean = jnp.sum(x, axis=-1, keepdims=True) * inv_n
    xc = x - mean
    var = jnp.sum(xc * xc, axis=-1, keepdims=True) * inv_n
    xn = xc * jax.lax.rsqrt(var + LN_EPS)

    # --- Linear(768, 20) + ReLU: bf16 MXU operands, f32 accumulation.
    #     w1_ref is already bf16 with gamma folded in; b1_ref carries beta @ W1 + b1. ---
    h1 = jnp.dot(xn.astype(jnp.bfloat16), w1_ref[...],
                 preferred_element_type=jnp.float32) + b1_ref[...]
    h1 = jnp.maximum(h1, 0.0)

    # --- Linear(20, 20) + ReLU (tiny; stay f32) ---
    h2 = jnp.dot(h1, w2_ref[...], preferred_element_type=jnp.float32) + b2_ref[...]
    h2 = jnp.maximum(h2, 0.0)

    # --- classifier Linear(20, 2) ---
    logits_ref[...] = (jnp.dot(h2, wc_ref[...], preferred_element_type=jnp.float32)
                       + bc_ref[...])


def make_params(vocab_size=128, max_position=64, key=jax.random.PRNGKey(0)):
    ks = jax.random.split(key, 10)
    return {
        "word_emb": jax.random.normal(ks[0], (vocab_size, HIDDEN), jnp.float32) * 0.02,
        "pos_emb":  jax.random.normal(ks[1], (max_position, HIDDEN), jnp.float32) * 0.02,
        # non-trivial affine so the gamma/beta -> W1/b1 fold is actually exercised
        "ln_gamma": 1.0 + 0.1 * jax.random.normal(ks[8], (1, HIDDEN), jnp.float32),
        "ln_beta":  0.1 * jax.random.normal(ks[9], (1, HIDDEN), jnp.float32),
        # weights stored [in, out] (transpose of torch nn.Linear storage)
        "w1": jax.random.normal(ks[2], (HIDDEN, MID), jnp.float32) * (1.0 / HIDDEN ** 0.5),
        "b1": jax.random.normal(ks[3], (1, MID), jnp.float32) * 0.01,
        "w2": jax.random.normal(ks[4], (MID, MID), jnp.float32) * (1.0 / MID ** 0.5),
        "b2": jax.random.normal(ks[5], (1, MID), jnp.float32) * 0.01,
        "wc": jax.random.normal(ks[6], (MID, NUM_LABELS), jnp.float32) * (1.0 / MID ** 0.5),
        "bc": jax.random.normal(ks[7], (1, NUM_LABELS), jnp.float32) * 0.01,
    }


def truncater_forward(input_ids, params):
    """input_ids: int32 [B, S]  ->  logits: float32 [B, NUM_LABELS]"""
    B, _S = input_ids.shape

    # CLS-only: only input_ids[:, 0] + pos_emb[0] contributes to the output.
    # The [B, 768] intermediate is materialized in bf16 to halve the HBM stream the
    # kernel re-reads.  LN stats are recovered in f32 inside the kernel.
    cls_ids = input_ids[:, 0]                                            # [B]
    emb = (jnp.take(params["word_emb"], cls_ids, axis=0)
           + params["pos_emb"][0][None, :]).astype(jnp.bfloat16)         # [B, 768] bf16
    # TODO(synk): for very large B, move the gather in-kernel (scalar-prefetched cls_ids
    # + manual row DMAs from word_emb in pl.ANY) to drop this intermediate entirely.

    # Fold LayerNorm affine into the first Linear (exact algebraic rewrite):
    #   (xn * gamma + beta) @ W1 + b1 == xn @ (gamma^T * W1) + (beta @ W1 + b1)
    w1f = (params["ln_gamma"].reshape(HIDDEN, 1) * params["w1"]).astype(jnp.bfloat16)
    b1f = params["ln_beta"] @ params["w1"] + params["b1"]                # [1, MID] f32

    # Even batch tiling: split B into near-equal tiles (multiple of 16 sublanes for the
    # bf16 block), and force >= 2 grid steps when there is enough work so the
    # "parallel" grid axis shards across both v7x TensorCores.
    num_tiles = max(pl.cdiv(B, MAX_TILE_B), 1)
    if num_tiles == 1 and B >= 16:
        num_tiles = 2
    tile_b = _round_up(pl.cdiv(B, num_tiles), 16)
    b_pad = num_tiles * tile_b
    if b_pad != B:
        emb = jnp.pad(emb, ((0, b_pad - B), (0, 0)))

    cost = pl.CostEstimate(
        flops=2 * b_pad * (HIDDEN * MID + MID * MID + MID * NUM_LABELS),
        transcendentals=b_pad,  # one rsqrt per row
        bytes_accessed=(b_pad * HIDDEN * 2                       # bf16 emb stream
                        + HIDDEN * MID * 2                       # bf16 W1'
                        + (MID * MID + 3 * MID + 3 * NUM_LABELS) * 4
                        + b_pad * NUM_LABELS * 4),               # f32 logits writeback
    )

    const2d = lambda i: (0, 0)       # weights / biases: resident across grid steps
    logits = pl.pallas_call(
        _truncater_cls_kernel,
        out_shape=jax.ShapeDtypeStruct((b_pad, NUM_LABELS), jnp.float32),
        grid=(num_tiles,),
        in_specs=[
            pl.BlockSpec((tile_b, HIDDEN), lambda i: (i, 0)),   # emb (bf16, streamed per tile)
            pl.BlockSpec((HIDDEN, MID), const2d),               # w1' (bf16, gamma folded)
            pl.BlockSpec((1, MID), const2d),                    # b1' (beta folded)
            pl.BlockSpec((MID, MID), const2d),                  # w2
            pl.BlockSpec((1, MID), const2d),                    # b2
            pl.BlockSpec((MID, NUM_LABELS), const2d),           # wc
            pl.BlockSpec((1, NUM_LABELS), const2d),             # bc
        ],
        out_specs=pl.BlockSpec((tile_b, NUM_LABELS), lambda i: (i, 0)),
        compiler_params=pltpu.CompilerParams(
            dimension_semantics=("parallel",)),                 # shard tiles across v7x's 2 TCs
        cost_estimate=cost,
    )(emb, w1f, b1f, params["w2"], params["b2"], params["wc"], params["bc"])

    return logits[:B]
    # TODO(synk): optional loss branches (MSE / CE / BCE on labels) not implemented —
    # the reference module returns loss=None when labels is None.


def _truncater_reference(input_ids, params):
    """Pure-JAX f32 reference of the original (all-token) forward, for correctness check."""
    _B, S = input_ids.shape
    x = jnp.take(params["word_emb"], input_ids, axis=0) + params["pos_emb"][:S][None, :, :]
    mean = jnp.mean(x, axis=-1, keepdims=True)
    var = jnp.mean((x - mean) ** 2, axis=-1, keepdims=True)
    xn = (x - mean) / jnp.sqrt(var + LN_EPS)
    xn = xn * params["ln_gamma"][0] + params["ln_beta"][0]
    h1 = jnp.maximum(xn @ params["w1"] + params["b1"][0], 0.0)
    h2 = jnp.maximum(h1 @ params["w2"] + params["b2"][0], 0.0)
    return h2[:, 0] @ params["wc"] + params["bc"][0]


if __name__ == "__main__":
    key = jax.random.PRNGKey(0)
    params = make_params(vocab_size=128, max_position=64, key=key)

    B, S = 2, 8
    input_ids = jax.random.randint(jax.random.PRNGKey(1), (B, S), 0, 128, dtype=jnp.int32)

    logits = truncater_forward(input_ids, params)
    jax.block_until_ready(logits)
    assert logits.shape == (B, NUM_LABELS) and logits.dtype == jnp.float32

    ref = _truncater_reference(input_ids, params)
    assert jnp.allclose(logits, ref, rtol=5e-2, atol=5e-2), (logits, ref)

    print("KERNEL_OK")
</pallas_src>

<mosaic_0001>
module attributes {stable_mosaic.version = 11 : i64} {
  func.func @_truncater_cls_kernel(%arg0: i32, %arg1: memref<16x768xbf16, #tpu.memory_space<vmem>>, %arg2: memref<768x20xbf16, #tpu.memory_space<vmem>>, %arg3: memref<1x20xf32, #tpu.memory_space<vmem>>, %arg4: memref<20x20xf32, #tpu.memory_space<vmem>>, %arg5: memref<1x20xf32, #tpu.memory_space<vmem>>, %arg6: memref<20x2xf32, #tpu.memory_space<vmem>>, %arg7: memref<1x2xf32, #tpu.memory_space<vmem>>, %arg8: memref<16x2xf32, #tpu.memory_space<vmem>>) attributes {dimension_semantics = [#tpu.dimension_semantics<parallel>], iteration_bounds = array<i64: 1>, scalar_prefetch = 0 : i64, scratch_operands = 0 : i64, tpu.core_type = #tpu.core_type<tc>, window_params = [{transform_indices = @transform_0, window_bounds = array<i64: 16, 768>}, {pipeline_mode = #tpu.pipeline_mode<synchronous>, transform_indices = @transform_1, window_bounds = array<i64: 768, 20>}, {pipeline_mode = #tpu.pipeline_mode<synchronous>, transform_indices = @transform_2, window_bounds = array<i64: 1, 20>}, {pipeline_mode = #tpu.pipeline_mode<synchronous>, transform_indices = @transform_3, window_bounds = array<i64: 20, 20>}, {pipeline_mode = #tpu.pipeline_mode<synchronous>, transform_indices = @transform_4, window_bounds = array<i64: 1, 20>}, {pipeline_mode = #tpu.pipeline_mode<synchronous>, transform_indices = @transform_5, window_bounds = array<i64: 20, 2>}, {pipeline_mode = #tpu.pipeline_mode<synchronous>, transform_indices = @transform_6, window_bounds = array<i64: 1, 2>}, {transform_indices = @transform_7, window_bounds = array<i64: 16, 2>}]} {
    %c0 = arith.constant 0 : index
    %c0_0 = arith.constant 0 : index
    %0 = vector.load %arg1[%c0, %c0_0] : memref<16x768xbf16, #tpu.memory_space<vmem>>, vector<16x768xbf16>
    %1 = arith.extf %0 : vector<16x768xbf16> to vector<16x768xf32>
    %cst = arith.constant dense<0.000000e+00> : vector<16xf32>
    %2 = vector.multi_reduction <add>, %1, %cst [1] : vector<16x768xf32> to vector<16xf32>
    %3 = vector.shape_cast %2 : vector<16xf32> to vector<16x1xf32>
    %cst_1 = arith.constant 0.00130208337 : f32
    %4 = vector.broadcast %cst_1 : f32 to vector<16x1xf32>
    %5 = arith.mulf %3, %4 : vector<16x1xf32>
    %6 = vector.broadcast %5 : vector<16x1xf32> to vector<16x768xf32>
    %7 = arith.subf %1, %6 : vector<16x768xf32>
    %8 = arith.mulf %7, %7 : vector<16x768xf32>
    %cst_2 = arith.constant dense<0.000000e+00> : vector<16xf32>
    %9 = vector.multi_reduction <add>, %8, %cst_2 [1] : vector<16x768xf32> to vector<16xf32>
    %10 = vector.shape_cast %9 : vector<16xf32> to vector<16x1xf32>
    %cst_3 = arith.constant 0.00130208337 : f32
    %11 = vector.broadcast %cst_3 : f32 to vector<16x1xf32>
    %12 = arith.mulf %10, %11 : vector<16x1xf32>
    %cst_4 = arith.constant 9.99999996E-13 : f32
    %13 = vector.broadcast %cst_4 : f32 to vector<16x1xf32>
    %14 = arith.addf %12, %13 : vector<16x1xf32>
    %15 = math.rsqrt %14 : vector<16x1xf32>
    %16 = vector.broadcast %15 : vector<16x1xf32> to vector<16x768xf32>
    %17 = arith.mulf %7, %16 : vector<16x768xf32>
    %18 = arith.truncf %17 : vector<16x768xf32> to vector<16x768xbf16>
    %c0_5 = arith.constant 0 : index
    %c0_6 = arith.constant 0 : index
    %19 = vector.load %arg2[%c0_5, %c0_6] : memref<768x20xbf16, #tpu.memory_space<vmem>>, vector<768x20xbf16>
    %cst_7 = arith.constant dense<0.000000e+00> : vector<16x20xf32>
    %20 = tpu.matmul %18, %19, %cst_7 {dimension_numbers = #tpu.dot_dimension_numbers<[1], [0], [0], [1], [0, 0, 1, 1], [], []>} : vector<16x768xbf16>, vector<768x20xbf16>, vector<16x20xf32> -> vector<16x20xf32>
    %c0_8 = arith.constant 0 : index
    %c0_9 = arith.constant 0 : index
    %21 = vector.load %arg3[%c0_8, %c0_9] : memref<1x20xf32, #tpu.memory_space<vmem>>, vector<1x20xf32>
    %22 = vector.broadcast %21 : vector<1x20xf32> to vector<16x20xf32>
    %23 = arith.addf %20, %22 : vector<16x20xf32>
    %cst_10 = arith.constant 0.000000e+00 : f32
    %24 = vector.broadcast %cst_10 : f32 to vector<16x20xf32>
    %25 = arith.maximumf %23, %24 : vector<16x20xf32>
    %c0_11 = arith.constant 0 : index
    %c0_12 = arith.constant 0 : index
    %26 = vector.load %arg4[%c0_11, %c0_12] : memref<20x20xf32, #tpu.memory_space<vmem>>, vector<20x20xf32>
    %cst_13 = arith.constant dense<0.000000e+00> : vector<16x20xf32>
    %27 = tpu.matmul %25, %26, %cst_13 {dimension_numbers = #tpu.dot_dimension_numbers<[1], [0], [0], [1], [0, 0, 1, 1], [], []>} : vector<16x20xf32>, vector<20x20xf32>, vector<16x20xf32> -> vector<16x20xf32>
    %c0_14 = arith.constant 0 : index
    %c0_15 = arith.constant 0 : index
    %28 = vector.load %arg5[%c0_14, %c0_15] : memref<1x20xf32, #tpu.memory_space<vmem>>, vector<1x20xf32>
    %29 = vector.broadcast %28 : vector<1x20xf32> to vector<16x20xf32>
    %30 = arith.addf %27, %29 : vector<16x20xf32>
    %cst_16 = arith.constant 0.000000e+00 : f32
    %31 = vector.broadcast %cst_16 : f32 to vector<16x20xf32>
    %32 = arith.maximumf %30, %31 : vector<16x20xf32>
    %c0_17 = arith.constant 0 : index
    %c0_18 = arith.constant 0 : index
    %33 = vector.load %arg6[%c0_17, %c0_18] : memref<20x2xf32, #tpu.memory_space<vmem>>, vector<20x2xf32>
    %cst_19 = arith.constant dense<0.000000e+00> : vector<16x2xf32>
    %34 = tpu.matmul %32, %33, %cst_19 {dimension_numbers = #tpu.dot_dimension_numbers<[1], [0], [0], [1], [0, 0, 1, 1], [], []>} : vector<16x20xf32>, vector<20x2xf32>, vector<16x2xf32> -> vector<16x2xf32>
    %c0_20 = arith.constant 0 : index
    %c0_21 = arith.constant 0 : index
    %35 = vector.load %arg7[%c0_20, %c0_21] : memref<1x2xf32, #tpu.memory_space<vmem>>, vector<1x2xf32>
    %36 = vector.broadcast %35 : vector<1x2xf32> to vector<16x2xf32>
    %37 = arith.addf %34, %36 : vector<16x2xf32>
    %c0_22 = arith.constant 0 : index
    %c0_23 = arith.constant 0 : index
    %38 = vector.load %arg8[%c0_22, %c0_23] : memref<16x2xf32, #tpu.memory_space<vmem>>, vector<16x2xf32>
    tpu.vector_store %arg8[%c0_22, %c0_23], %37 {strides = array<i32>} : memref<16x2xf32, #tpu.memory_space<vmem>>, vector<16x2xf32>,
    return
  }
  func.func @transform_0(%arg0: i32) -> (i32, i32) {
    %c0_i32 = arith.constant 0 : i32
    %c0_i32_0 = arith.constant 0 : i32
    return %arg0, %c0_i32 : i32, i32
  }
  func.func @transform_1(%arg0: i32) -> (i32, i32) {
    %c0_i32 = arith.constant 0 : i32
    %c0_i32_0 = arith.constant 0 : i32
    %c0_i32_1 = arith.constant 0 : i32
    return %c0_i32, %c0_i32_0 : i32, i32
  }
  func.func @transform_2(%arg0: i32) -> (i32, i32) {
    %c0_i32 = arith.constant 0 : i32
    %c0_i32_0 = arith.constant 0 : i32
    %c0_i32_1 = arith.constant 0 : i32
    return %c0_i32, %c0_i32_0 : i32, i32
  }
  func.func @transform_3(%arg0: i32) -> (i32, i32) {
    %c0_i32 = arith.constant 0 : i32
    %c0_i32_0 = arith.constant 0 : i32
    %c0_i32_1 = arith.constant 0 : i32
    return %c0_i32, %c0_i32_0 : i32, i32
  }
  func.func @transform_4(%arg0: i32) -> (i32, i32) {
    %c0_i32 = arith.constant 0 : i32
    %c0_i32_0 = arith.constant 0 : i32
    %c0_i32_1 = arith.constant 0 : i32
    return %c0_i32, %c0_i32_0 : i32, i32
  }
  func.func @transform_5(%arg0: i32) -> (i32, i32) {
    %c0_i32 = arith.constant 0 : i32
    %c0_i32_0 = arith.constant 0 : i32
    %c0_i32_1 = arith.constant 0 : i32
    return %c0_i32, %c0_i32_0 : i32, i32
  }
  func.func @transform_6(%arg0: i32) -> (i32, i32) {
    %c0_i32 = arith.constant 0 : i32
    %c0_i32_0 = arith.constant 0 : i32
    %c0_i32_1 = arith.constant 0 : i32
    return %c0_i32, %c0_i32_0 : i32, i32
  }
  func.func @transform_7(%arg0: i32) -> (i32, i32) {
    %c0_i32 = arith.constant 0 : i32
    %c0_i32_0 = arith.constant 0 : i32
    return %arg0, %c0_i32 : i32, i32
  }
}

</mosaic_0001>

<bundles_post_ra>
// kernel: tpu_custom_call.1
= control target key start
LH: loop header
LB: loop body
LE: loop exit
PB: predicated region body
PF: predicated region fallthrough
CT: control target
= control target key end

     0   :  { %vm628_vm6 = vcmask 1043456   ;;  %vm621_vm7 = vcmask 162816   ;;  %vm696_vm8 = vcmask 15360   ;;  %s1255_s0 = inlined_call_operand.vmem [shape: bf16[16,768], index: 0, kind: input, shape index: {}]   ;;  %s1256_s1 = inlined_call_operand.vmem [shape: bf16[768,20], index: 1, kind: input, shape index: {}]   ;;  %s1257_s2 = inlined_call_operand.vmem [shape: f32[1,20], index: 2, kind: input, shape index: {}]   ;;  %s1258_s4 = inlined_call_operand.vmem [shape: f32[1,20], index: 4, kind: input, shape index: {}]   ;;  %s1259_s3 = inlined_call_operand.vmem [shape: f32[20,20], index: 3, kind: input, shape index: {}]   ;;  %s1260_s5 = inlined_call_operand.vmem [shape: f32[20,2], index: 5, kind: input, shape index: {}]   ;;  %s1261_s6 = inlined_call_operand.vmem [shape: f32[1,2], index: 6, kind: input, shape index: {}]   ;;  %s1262_s7 = inlined_call_operand.vmem [shape: f32[16,2], index: 7, kind: output, shape index: {}]  }
   0x1   :  { %v26_v0 = vld [vmem:[%s1255_s0] sm:$0xff]  ;;  %v27_v1 = vld [vmem:[%s1255_s0 + $0x8] sm:$0xff]  ;;  %v29_v5 = vld [vmem:[%s1255_s0 + $0x18] sm:$0xff] }
   0x2   :  { %v32_v2 = vunpack.c.l.bf16 %v26_v0  ;;  %v33_v3 = vunpack.c.h.bf16 %v26_v0  ;;  %v34_v4 = vunpack.c.l.bf16 %v27_v1  ;;  %v30_v6 = vld [vmem:[%s1255_s0 + $0x20] sm:$0xff]  ;;  %v28_v7 = vld [vmem:[%s1255_s0 + $0x10] sm:$0xff]  ;;  %v38_v8 = vunpack.c.l.bf16 %v29_v5  ;;  %v31_v17 = vld [vmem:[%s1255_s0 + $0x28] sm:$0xff] }
   0x3   :  { %v39_v9 = vunpack.c.h.bf16 %v29_v5  ;;  %v35_v10 = vunpack.c.h.bf16 %v27_v1  ;;  %v40_v12 = vunpack.c.l.bf16 %v30_v6  ;;  %v36_v14 = vunpack.c.l.bf16 %v28_v7  ;;  %v908_v28 = vld [vmem:[%s1256_s1 + $0x38] sm:$0xff]  ;;  %v907_v30 = vld [vmem:[%s1256_s1 + $0x30] sm:$0xff]  ;;  %v906_v32 = vld [vmem:[%s1256_s1 + $0x28] sm:$0xff] }
   0x4   :  { %v44_v11 = vadd.f32 %v33_v3, %v32_v2  ;;  %v41_v16 = vunpack.c.h.bf16 %v30_v6  ;;  %v37_v19 = vunpack.c.h.bf16 %v28_v7  ;;  %v42_v22 = vunpack.c.l.bf16 %v31_v17  ;;  %v916_v29 = vld [vmem:[%s1256_s1 + $0x78] sm:$0xff]  ;;  %528 = vmatpush.bf16.msra.mxu0 %v908_v28  ;;  %v915_v31 = vld [vmem:[%s1256_s1 + $0x70] sm:$0xff]  ;;  %v914_v34 = vld [vmem:[%s1256_s1 + $0x68] sm:$0xff] }
   0x5   :  { %v51_v13 = vadd.f32 %v39_v9, %v38_v8  ;;  %v43_v25 = vunpack.c.h.bf16 %v31_v17  ;;  %542 = vmatpush.bf16.msra.mxu1 %v916_v29  ;;  %v911_v17 = vld [vmem:[%s1256_s1 + $0x50] sm:$0xff]  ;;  %v940_v28 = vld [vmem:[%s1256_s1 + $0x138] sm:$0xff] }
   0x6   :  { %v45_v15 = vadd.f32 %v44_v11, %v34_v4  ;;  %v932_v11 = vld [vmem:[%s1256_s1 + $0xf8] sm:$0xff] }
   0x7   :  { %v52_v18 = vadd.f32 %v51_v13, %v40_v12  ;;  %570 = vmatpush.bf16.msra.mxu3 %v932_v11  ;;  %v912_v13 = vld [vmem:[%s1256_s1 + $0x58] sm:$0xff] }
   0x8   :  { %v46_v20 = vadd.f32 %v45_v15, %v35_v10  ;;  %529 = vmatpush.bf16.msra.mxu0 %v907_v30  ;;  %v931_v15 = vld [vmem:[%s1256_s1 + $0xf0] sm:$0xff]  ;;  %v948_v29 = vld [vmem:[%s1256_s1 + $0x178] sm:$0xff] }
   0x9   :  { %v53_v23 = vadd.f32 %v52_v18, %v41_v16  ;;  %543 = vmatpush.bf16.msra.mxu1 %v915_v31  ;;  %v922_v18 = vld [vmem:[%s1256_s1 + $0xa8] sm:$0xff]  ;;  %v919_v30 = vld [vmem:[%s1256_s1 + $0x90] sm:$0xff] }
   0xa   :  { %v47_v21 = vadd.f32 %v46_v20, %v36_v14  ;;  %v902_v20 = vld [vmem:[%s1256_s1 + $0x8] sm:$0xff]  ;;  %v927_v31 = vld [vmem:[%s1256_s1 + $0xd0] sm:$0xff] }
   0xb   :  { %v54_v26 = vadd.f32 %v53_v23, %v42_v22  ;;  %571 = vmatpush.bf16.msra.mxu3 %v931_v15  ;;  %v929_v23 = vld [vmem:[%s1256_s1 + $0xe0] sm:$0xff] }
   0xc   :  { %v48_v24 = vadd.f32 %v47_v21, %v37_v19  ;;  %530 = vmatpush.bf16.msra.mxu0 %v906_v32  ;;  %v910_v21 = vld [vmem:[%s1256_s1 + $0x48] sm:$0xff]  ;;  %v939_v32 = vld [vmem:[%s1256_s1 + $0x130] sm:$0xff] }
   0xd   :  { %v55_v27 = vadd.f32 %v54_v26, %v43_v25  ;;  %544 = vmatpush.bf16.msra.mxu1 %v914_v34  ;;  %v920_v26 = vld [vmem:[%s1256_s1 + $0x98] sm:$0xff]  ;;  %v918_v34 = vld [vmem:[%s1256_s1 + $0x88] sm:$0xff] }
   0xe   :  { %49 = vadd.xlane.f32.xlu0 %v48_v24  ;;  %v901_v24 = vld [vmem:[%s1256_s1] sm:$0xff] }
  0x16   :  { %56 = vadd.xlane.f32.xlu0 %v55_v27  ;;  %v928_v27 = vld [vmem:[%s1256_s1 + $0xd8] sm:$0xff] }
  0x81   :  { %v50_v33 = vpop.xlane.xlu0 %49 }
  0x82   :  { %v58_v35 = vmul.f32 0.0013020834, %v50_v33  ;;  %v947_v33 = vld [vmem:[%s1256_s1 + $0x170] sm:$0xff] }
  0x84   :  { %v1032_v36 = vsub.f32 %v32_v2, %v58_v35  ;;  %v1034_v37 = vsub.f32 %v33_v3, %v58_v35  ;;  %v1036_v38 = vsub.f32 %v34_v4, %v58_v35  ;;  %v1038_v39 = vsub.f32 %v35_v10, %v58_v35  ;;  %v924_v10 = vld [vmem:[%s1256_s1 + $0xb8] sm:$0xff] }
  0x85   :  { %v1044_v42 = vsub.f32 %v36_v14, %v58_v35  ;;  %v1048_v46 = vsub.f32 %v37_v19, %v58_v35  ;;  %556 = vmatpush.bf16.msra.mxu2 %v924_v10  ;;  %v923_v14 = vld [vmem:[%s1256_s1 + $0xb0] sm:$0xff]  ;;  %v930_v19 = vld [vmem:[%s1256_s1 + $0xe8] sm:$0xff] }
  0x86   :  { %v72_v40 = vmul.f32 %v1032_v36, %v1032_v36  ;;  %v73_v41 = vmul.f32 %v1034_v37, %v1034_v37  ;;  %v74_v43 = vmul.f32 %v1036_v38, %v1036_v38  ;;  %v75_v48 = vmul.f32 %v1038_v39, %v1038_v39  ;;  %572 = vmatpush.bf16.msra.mxu3 %v930_v19  ;;  %v926_v35 = vld [vmem:[%s1256_s1 + $0xc8] sm:$0xff] }
  0x87   :  { %v76_v50 = vmul.f32 %v1044_v42, %v1044_v42  ;;  %v77_v55 = vmul.f32 %v1048_v46, %v1048_v46 }
  0x88   :  { %v84_v44 = vadd.f32 %v73_v41, %v72_v40  ;;  %v938_v40 = vld [vmem:[%s1256_s1 + $0x128] sm:$0xff] }
  0x89   :  { %v57_v45 = vpop.xlane.xlu0 %56  ;;  %557 = vmatpush.bf16.msra.mxu2 %v923_v14  ;;  %v946_v41 = vld [vmem:[%s1256_s1 + $0x168] sm:$0xff] }
  0x8a   :  { %v59_v47 = vmul.f32 0.0013020834, %v57_v45  ;;  %v85_v49 = vadd.f32 %v84_v44, %v74_v43  ;;  %573 = vmatpush.bf16.msra.mxu3 %v929_v23  ;;  %v917_v43 = vld [vmem:[%s1256_s1 + $0x80] sm:$0xff] }
  0x8b   :  { %v925_v44 = vld [vmem:[%s1256_s1 + $0xc0] sm:$0xff] }
  0x8c   :  { %v86_v51 = vadd.f32 %v85_v49, %v75_v48  ;;  %v1054_v52 = vsub.f32 %v38_v8, %v59_v47  ;;  %v1056_v53 = vsub.f32 %v39_v9, %v59_v47  ;;  %v1058_v54 = vsub.f32 %v40_v12, %v59_v47  ;;  %v905_v8 = vld [vmem:[%s1256_s1 + $0x20] sm:$0xff]  ;;  %v904_v12 = vld [vmem:[%s1256_s1 + $0x18] sm:$0xff] }
  0x8d   :  { %v1062_v57 = vsub.f32 %v41_v16, %v59_v47  ;;  %v1068_v61 = vsub.f32 %v42_v22, %v59_v47  ;;  %v1072_v0 = vsub.f32 %v43_v25, %v59_v47  ;;  %v913_v9 = vld [vmem:[%s1256_s1 + $0x60] sm:$0xff]  ;;  %531 = vmatpush.bf16.msra.mxu0 %v905_v8  ;;  %v903_v16 = vld [vmem:[%s1256_s1 + $0x10] sm:$0xff]  ;;  %558 = vmatpush.bf16.msra.mxu2 %v922_v18 }
  0x8e   :  { %v87_v56 = vadd.f32 %v86_v51, %v76_v50  ;;  %v78_v58 = vmul.f32 %v1054_v52, %v1054_v52  ;;  %v79_v59 = vmul.f32 %v1056_v53, %v1056_v53  ;;  %v80_v62 = vmul.f32 %v1058_v54, %v1058_v54  ;;  %545 = vmatpush.bf16.msra.mxu1 %v913_v9  ;;  %v921_v22 = vld [vmem:[%s1256_s1 + $0xa0] sm:$0xff]  ;;  %v936_v51 = vld [vmem:[%s1256_s1 + $0x118] sm:$0xff] }
  0x8f   :  { %v81_v1 = vmul.f32 %v1062_v57, %v1062_v57  ;;  %v82_v3 = vmul.f32 %v1068_v61, %v1068_v61  ;;  %v83_v5 = vmul.f32 %v1072_v0, %v1072_v0  ;;  %v909_v25 = vld [vmem:[%s1256_s1 + $0x40] sm:$0xff]  ;;  %574 = vmatpush.bf16.msra.mxu3 %v928_v27 }
  0x90   :  { %v88_v60 = vadd.f32 %v87_v56, %v77_v55  ;;  %v91_v63 = vadd.f32 %v79_v59, %v78_v58  ;;  %v937_v45 = vld [vmem:[%s1256_s1 + $0x120] sm:$0xff]  ;;  %v944_v55 = vld [vmem:[%s1256_s1 + $0x158] sm:$0xff]  ;;  %v935_v56 = vld [vmem:[%s1256_s1 + $0x110] sm:$0xff] }
  0x91   :  { %532 = vmatpush.bf16.msra.mxu0 %v904_v12  ;;  %559 = vmatpush.bf16.msra.mxu2 %v921_v22  ;;  %v945_v47 = vld [vmem:[%s1256_s1 + $0x160] sm:$0xff]  ;;  %v943_v58 = vld [vmem:[%s1256_s1 + $0x150] sm:$0xff] }
  0x92   :  { %89 = vadd.xlane.f32.xlu1 %v88_v60  ;;  %v92_v2 = vadd.f32 %v91_v63, %v80_v62  ;;  %546 = vmatpush.bf16.msra.mxu1 %v912_v13  ;;  %v934_v62 = vld [vmem:[%s1256_s1 + $0x108] sm:$0xff] }
  0x93   :  { %575 = vmatpush.bf16.msra.mxu3 %v927_v31  ;;  %v942_v63 = vld [vmem:[%s1256_s1 + $0x148] sm:$0xff]  ;;  %v949_v31 = vld [vmem:[%s1257_s2] ss:$0 sm:$0xff] }
  0x94   :  { %v93_v4 = vadd.f32 %v92_v2, %v81_v1 }
  0x95   :  { %533 = vmatpush.bf16.msra.mxu0 %v903_v16  ;;  %560 = vmatpush.bf16.msra.mxu2 %v920_v26 }
  0x96   :  { %v94_v6 = vadd.f32 %v93_v4, %v82_v3  ;;  %547 = vmatpush.bf16.msra.mxu1 %v911_v17 }
  0x97   :  { %576 = vmatpush.bf16.msra.mxu3 %v926_v35 }
  0x98   :  { %v95_v7 = vadd.f32 %v94_v6, %v83_v5  ;;  %v933_v5 = vld [vmem:[%s1256_s1 + $0x100] sm:$0xff] }
  0x99   :  { %534 = vmatpush.bf16.msra.mxu0 %v902_v20  ;;  %561 = vmatpush.bf16.msra.mxu2 %v919_v30  ;;  %v941_v6 = vld [vmem:[%s1256_s1 + $0x140] sm:$0xff] }
  0x9a   :  { %96 = vadd.xlane.f32.xlu1 %v95_v7  ;;  %548 = vmatpush.bf16.msra.mxu1 %v910_v21 }
  0x9b   :  { %577 = vmatpush.bf16.msra.mxu3 %v925_v44 }
  0x9d   :  { %535 = vmatpush.bf16.msra.mxu0 %v901_v24  ;;  %562 = vmatpush.bf16.msra.mxu2 %v918_v34 }
  0x9e   :  { %549 = vmatpush.bf16.msra.mxu1 %v909_v25 }
  0xa1   :  { %584 = vmatpush.bf16.msrb.mxu0 %v940_v28  ;;  %563 = vmatpush.bf16.msra.mxu2 %v917_v43 }
  0xa2   :  { %598 = vmatpush.bf16.msrb.mxu1 %v948_v29 }
  0xa5   :  { %585 = vmatpush.bf16.msrb.mxu0 %v939_v32 }
  0xa6   :  { %599 = vmatpush.bf16.msrb.mxu1 %v947_v33 }
  0xa9   :  { %586 = vmatpush.bf16.msrb.mxu0 %v938_v40 }
  0xaa   :  { %600 = vmatpush.bf16.msrb.mxu1 %v946_v41 }
  0xad   :  { %587 = vmatpush.bf16.msrb.mxu0 %v937_v45 }
  0xae   :  { %601 = vmatpush.bf16.msrb.mxu1 %v945_v47 }
  0xb1   :  { %588 = vmatpush.bf16.msrb.mxu0 %v936_v51 }
  0xb2   :  { %602 = vmatpush.bf16.msrb.mxu1 %v944_v55 }
  0xb5   :  { %589 = vmatpush.bf16.msrb.mxu0 %v935_v56 }
  0xb6   :  { %603 = vmatpush.bf16.msrb.mxu1 %v943_v58 }
  0xb9   :  { %590 = vmatpush.bf16.msrb.mxu0 %v934_v62 }
  0xba   :  { %604 = vmatpush.bf16.msrb.mxu1 %v942_v63 }
  0xbd   :  { %591 = vmatpush.bf16.msrb.mxu0 %v933_v5  ;;  %v950_v5 = vld [vmem:[%s1258_s4] ss:$0 sm:$0xff] }
  0xbe   :  { %605 = vmatpush.bf16.msrb.mxu1 %v941_v6 }
 0x105   :  { %v90_v48 = vpop.xlane.xlu1 %89 }
 0x106   :  { %v98_v49 = vmul.f32 0.0013020834, %v90_v48 }
 0x108   :  { %v100_v50 = vadd.f32 1e-12, %v98_v49 }
 0x10a   :  { %952 = vrsqrt.f32 %v100_v50  ;;  %vm108_vm1 = vweird.f32 %v100_v50 }
 0x10d   :  { %v97_v59 = vpop.xlane.xlu1 %96 }
 0x10e   :  { %v99_v60 = vmul.f32 0.0013020834, %v97_v59 }
 0x110   :  { %v953_v1 = vpop.eup %952  ;;  %v101_v2 = vadd.f32 1e-12, %v99_v60 }
 0x111   :  { %v103_v3 = vmul.f32 %v953_v1, %v100_v50  ;;  %vm109_vm0 = vweird.f32 %v953_v1 }
 0x112   :  { %954 = vrsqrt.f32 %v101_v2  ;;  %vm110_vm2 = vmor %vm108_vm1, %vm109_vm0  ;;  %vm118_vm4 = vweird.f32 %v101_v2 }
 0x113   :  { %v104_v4 = vmul.f32 %v953_v1, %v103_v3 }
 0x115   :  { %v105_v7 = vmul.f32 0.5, %v104_v4  ;;  %v657_v4 = vld [vmem:[%s1260_s5] sm:$0xff] }
 0x117   :  { %v106_v8 = vsub.f32 1.5, %v105_v7 }
 0x118   :  { %v955_v9 = vpop.eup %954 }
 0x119   :  { %v113_v10 = vmul.f32 %v955_v9, %v101_v2  ;;  %v107_v11 = vmul.f32 %v953_v1, %v106_v8  ;;  %vm119_vm3 = vweird.f32 %v955_v9 }
 0x11a   :  { %vm120_vm5 = vmor %vm118_vm4, %vm119_vm3 }
 0x11b   :  { %v114_v12 = vmul.f32 %v955_v9, %v113_v10  ;;  %v111_v14 = vsel %vm110_vm2, %v953_v1, %v107_v11 }
 0x11c   :  { %v122_v17 = vmul.f32 %v111_v14, %v1032_v36  ;;  %v123_v19 = vmul.f32 %v111_v14, %v1034_v37  ;;  %v124_v20 = vmul.f32 %v111_v14, %v1036_v38  ;;  %v125_v21 = vmul.f32 %v111_v14, %v1038_v39 }
 0x11d   :  { %v115_v13 = vmul.f32 0.5, %v114_v12  ;;  %v126_v38 = vmul.f32 %v111_v14, %v1044_v42  ;;  %v127_v39 = vmul.f32 %v111_v14, %v1048_v46  ;;  %v614_v42 = vld [vmem:[%s1259_s3] sm:$0xff]  ;;  %v659_v46 = vld [vmem:[%s1260_s5 + $0x10] sm:$0xf] }
 0x11e   :  { %898 = vmatpush.msk.msrb.mxu3 %vm628_vm6, %v659_v46  ;;  %v951_v12 = vld [vmem:[%s1261_s6] ss:$0 sm:$0xff] }
 0x11f   :  { %v116_v15 = vsub.f32 1.5, %v115_v13 }
 0x121   :  { %v117_v16 = vmul.f32 %v955_v9, %v116_v15 }
 0x123   :  { %v121_v18 = vsel %vm120_vm5, %v955_v9, %v117_v16 }
 0x124   :  { %v128_v22 = vmul.f32 %v121_v18, %v1054_v52  ;;  %v129_v23 = vmul.f32 %v121_v18, %v1056_v53  ;;  %v130_v24 = vmul.f32 %v121_v18, %v1058_v54  ;;  %v131_v25 = vmul.f32 %v121_v18, %v1062_v57  ;;  %v616_v54 = vld [vmem:[%s1259_s3 + $0x10] sm:$0xf]  ;;  %v615_v57 = vld [vmem:[%s1259_s3 + $0x8] sm:$0xff] }
 0x125   :  { %v132_v36 = vmul.f32 %v121_v18, %v1068_v61  ;;  %v133_v37 = vmul.f32 %v121_v18, %v1072_v0  ;;  %895 = vmatpush.msk.msrb.mxu2 %vm628_vm6, %v616_v54  ;;  %v658_v61 = vld [vmem:[%s1260_s5 + $0x8] sm:$0xff] }
 0x126   :  { %v134_v26 = vpack.c.bf16 %v128_v22, %v122_v17  ;;  %v135_v27 = vpack.c.bf16 %v129_v23, %v123_v19  ;;  %v136_v28 = vpack.c.bf16 %v130_v24, %v124_v20  ;;  %v137_v29 = vpack.c.bf16 %v131_v25, %v125_v21  ;;  %687 = vmatpush.msrb.mxu3 %v658_v61 }
 0x127   :  { %v138_v52 = vpack.c.bf16 %v132_v36, %v126_v38  ;;  %v139_v53 = vpack.c.bf16 %v133_v37, %v127_v39  ;;  %646 = vmatpush.msrb.mxu2 %v615_v57 }
 0x128   :  { %536 = vmatmul.bf16.vlgmr.msra.gmra.mxu0 %v134_v26  ;;  %550 = vmatmul.bf16.vlgmr.msra.gmra.mxu1 %v135_v27 }
 0x129   :  { %564 = vmatmul.bf16.vlgmr.msra.gmra.mxu2 %v136_v28  ;;  %578 = vmatmul.bf16.vlgmr.msra.gmra.mxu3 %v137_v29 }
 0x12a   :  { %647 = vmatpush.msrb.mxu2 %v614_v42  ;;  %688 = vmatpush.msrb.mxu3 %v657_v4 }
 0x138   :  { %592 = vmatmul.bf16.vlgmr.msrb.gmra.mxu0 %v138_v52  ;;  %606 = vmatmul.bf16.vlgmr.msrb.gmra.mxu1 %v139_v53 }
 0x1a5   :  { %v537_v0 = vpop.f32.mrf.mxu0  ;;  %v551_v30 = vpop.f32.mrf.mxu1 }
 0x1a6   :  { %v538_v32 = vadd.f32 %v949_v31, %v537_v0 }
 0x1a8   :  { %v552_v40 = vadd.f32 %v551_v30, %v538_v32 }
 0x1ac   :  { %v565_v33 = vpop.f32.mrf.mxu2  ;;  %v579_v43 = vpop.f32.mrf.mxu3 }
 0x1ad   :  { %v539_v34 = vpop.f32.mrf.mxu0  ;;  %v553_v35 = vpop.f32.mrf.mxu1  ;;  %v566_v41 = vadd.f32 %v565_v33, %v552_v40 }
 0x1ae   :  { %v540_v44 = vadd.f32 %v949_v31, %v539_v34 }
 0x1af   :  { %v580_v45 = vadd.f32 %v579_v43, %v566_v41 }
 0x1b0   :  { %v554_v50 = vadd.f32 %v553_v35, %v540_v44 }
 0x1b4   :  { %v567_v47 = vpop.f32.mrf.mxu2  ;;  %v581_v59 = vpop.f32.mrf.mxu3 }
 0x1b5   :  { %v593_v48 = vpop.f32.mrf.mxu0  ;;  %v607_v49 = vpop.f32.mrf.mxu1  ;;  %v568_v55 = vadd.f32 %v567_v47, %v554_v50 }
 0x1b6   :  { %v594_v51 = vadd.f32 %v593_v48, %v580_v45 }
 0x1b7   :  { %v582_v60 = vadd.f32 %v581_v59, %v568_v55 }
 0x1b8   :  { %v608_v56 = vadd.f32 %v607_v49, %v594_v51 }
 0x1ba   :  { %v612_v58 = vmax.f32 %v608_v56, 0.0 }
 0x1bc   :  { %896 = vmatmul.msk.f32.vlgmr.msrb.gmra.mxu2 %vm621_vm7, %v612_v58 }
 0x1bd   :  { %v595_v62 = vpop.f32.mrf.mxu0  ;;  %v609_v1 = vpop.f32.mrf.mxu1 }
 0x1be   :  { %v596_v63 = vadd.f32 %v595_v62, %v582_v60 }
 0x1c0   :  { %v610_v2 = vadd.f32 %v609_v1, %v596_v63 }
 0x1c2   :  { %v613_v3 = vmax.f32 %v610_v2, 0.0 }
 0x1c4   :  { %897 = vmatmul.msk.f32.gmra.mxu2 %vm621_vm7, %v613_v3 }
 0x23f   :  { %v649_v6 = vpop.f32.mrf.mxu2 }
 0x240   :  { %v650_v7 = vadd.f32 %v950_v5, %v649_v6 }
 0x242   :  { %v655_v8 = vmax.f32 %v650_v7, 0.0 }
 0x244   :  { %899 = vmatmul.msk.f32.vlgmr.msrb.gmra.mxu3 %vm621_vm7, %v655_v8 }
 0x247   :  { %v652_v9 = vpop.f32.mrf.mxu2 }
 0x248   :  { %v653_v10 = vadd.f32 %v950_v5, %v652_v9 }
 0x24a   :  { %v656_v11 = vmax.f32 %v653_v10, 0.0 }
 0x24c   :  { %900 = vmatmul.msk.f32.gmra.mxu3 %vm621_vm7, %v656_v11 }
 0x2c7   :  { %v690_v13 = vpop.f32.mrf.mxu3 }
 0x2c8   :  { %v691_v14 = vadd.f32 %v951_v12, %v690_v13 }
 0x2ca   :  { %697 = vst.msk [vmem:[%s1262_s7] sm:$0xff] %vm696_vm8, %v691_v14 }
 0x2cf   :  { %v693_v15 = vpop.f32.mrf.mxu3 }
 0x2d0   :  { %v694_v16 = vadd.f32 %v951_v12, %v693_v15 }
 0x2d2   :  { %698 = vst.msk [vmem:[%s1262_s7 + $0x8] sm:$0xff] %vm696_vm8, %v694_v16 }

</bundles_post_ra>
